<compile_context>
chip_gen: v6e
topology: v6e:2x2x1
jax: 0.10.0
libtpu: 0.0.40
codegen_flags: <defaults>
</compile_context>

<pallas_src>
import functools
import math

import jax
import jax.numpy as jnp
import numpy as np
from jax.experimental import pallas as pl
from jax.experimental.pallas import tpu as pltpu


# ----------------------------------------------------------------------------
# Generation-aware VMEM budget and lane-dense tile selection
# ----------------------------------------------------------------------------
def _physical_vmem_bytes():
    try:
        return int(pltpu.get_tpu_info().vmem_capacity_bytes)
    except Exception:
        return 64 << 20  # conservative fallback: v7x per-TensorCore VMEM


def _pick_spatial_tile(hw, batch, cin, cout, in_itemsize, out_itemsize,
                       tile_budget_bytes):
    """Largest lane-dense (128-multiple) spatial tile fitting the VMEM budget.

    Guarantees >= 2 total grid programs when the shape allows it (double-buffer
    overlap everywhere; work for v7x's second TensorCore when B == 1)."""
    if hw <= 128:
        return hw  # block dim == full array dim is always legal
    # Double-buffered input + output VMEM bytes per lane (spatial column).
    per_lane = 2 * (cin * in_itemsize + cout * out_itemsize)
    t = (tile_budget_bytes // per_lane) // 128 * 128
    t = int(max(128, min(t, (hw // 128) * 128)))
    if batch < 2 and t >= hw:
        # Force at least two spatial tiles so a 'parallel' axis has >= 2 programs.
        t = int(max(128, ((hw - 1) // 128) * 128))
    return t


# ----------------------------------------------------------------------------
# Pallas kernel: 1x1 conv on NCHW, per (batch, spatial-tile) grid point
# ----------------------------------------------------------------------------
def _proj1x1_kernel(x_ref, w_ref, b_ref, o_ref):
    # x_ref: (1, Cin, T)   w_ref: (Cout, Cin)   b_ref: (Cout, 1)   o_ref: (1, Cout, T)
    acc = jnp.dot(w_ref[...], x_ref[0], preferred_element_type=jnp.float32)
    o_ref[0] = (acc + b_ref[...]).astype(o_ref.dtype)


def conv1x1_nchw(x, w, b, *, out_dtype=None):
    """1x1 conv: out[n, :, h, w] = w @ x[n, :, h, w] + b; NCHW in / NCHW out."""
    B, Cin, H, W = x.shape
    Cout = w.shape[0]
    hw = H * W
    out_dtype = jnp.dtype(out_dtype) if out_dtype is not None else x.dtype

    x3 = x.reshape(B, Cin, hw)                    # free reshape (contiguous)
    b2 = b.astype(jnp.float32).reshape(Cout, 1)   # f32 bias, broadcast on lanes

    in_isz = x.dtype.itemsize
    out_isz = out_dtype.itemsize

    phys_vmem = _physical_vmem_bytes()
    tile_budget = int(phys_vmem * 0.35)           # for double-buffered in+out tiles
    t = _pick_spatial_tile(hw, B, Cin, Cout, in_isz, out_isz, tile_budget)
    grid = (B, pl.cdiv(hw, t))                    # Pallas masks the ragged edge block

    # Explicit scoped-VMEM limit: big tiles can exceed the per-generation default
    # (16 MiB on v5e); stay comfortably under physical VMEM (64 MiB on v7x).
    vmem_used = 2 * t * (Cin * in_isz + Cout * out_isz) + (1 << 20)  # + W/B/padding slack
    vmem_limit = int(min(phys_vmem - (4 << 20), max(vmem_used + (4 << 20), 32 << 20)))

    flops = 2 * B * hw * Cin * Cout
    bytes_accessed = (B * hw * (Cin * in_isz + Cout * out_isz)
                      + w.size * w.dtype.itemsize + b.size * 4)

    z3 = pl.pallas_call(
        _proj1x1_kernel,
        out_shape=jax.ShapeDtypeStruct((B, Cout, hw), out_dtype),
        grid=grid,
        in_specs=[
            pl.BlockSpec((1, Cin, t), lambda bi, si: (bi, 0, si)),
            pl.BlockSpec((Cout, Cin), lambda bi, si: (0, 0)),
            pl.BlockSpec((Cout, 1), lambda bi, si: (0, 0)),
        ],
        out_specs=pl.BlockSpec((1, Cout, t), lambda bi, si: (bi, 0, si)),
        compiler_params=pltpu.CompilerParams(
            dimension_semantics=("parallel", "parallel"),
            vmem_limit_bytes=vmem_limit),
        cost_estimate=pl.CostEstimate(
            flops=flops, transcendentals=0, bytes_accessed=bytes_accessed),
    )(x3, w, b2)
    return z3.reshape(B, Cout, H, W)


# ----------------------------------------------------------------------------
# PixelShuffle (pure layout permutation) + full PatchUnEmbed forward
# ----------------------------------------------------------------------------
def pixel_shuffle_nchw(z, p):
    B, Cpp, H, W = z.shape
    C = Cpp // (p * p)
    z = z.reshape(B, C, p, p, H, W)
    z = jnp.transpose(z, (0, 1, 4, 2, 5, 3))   # (B, C, H, p, W, p)
    return z.reshape(B, C, H * p, W * p)


def patch_unembed_forward(x, params, *, patch_size=4, use_bf16=False):
    w, b = params["w"], params["b"]
    if use_bf16:
        # bf16-in-HBM path: halves input DMA and the pixel-shuffle round trip.
        # MXU accumulation stays f32 (preferred_element_type in the kernel).
        x = x.astype(jnp.bfloat16)
        w = w.astype(jnp.bfloat16)
        out_dtype = jnp.bfloat16
    else:
        out_dtype = x.dtype
    z = conv1x1_nchw(x, w, b, out_dtype=out_dtype)
    return pixel_shuffle_nchw(z, patch_size)


# ----------------------------------------------------------------------------
# Independent reference PixelShuffle (matches torch.nn.PixelShuffle semantics)
# ----------------------------------------------------------------------------
def _ref_pixel_shuffle_np(z, p):
    B, Cpp, H, W = z.shape
    C = Cpp // (p * p)
    y = np.zeros((B, C, H * p, W * p), dtype=z.dtype)
    for c in range(C):
        for i in range(p):
            for j in range(p):
                y[:, c, i::p, j::p] = z[:, c * p * p + i * p + j, :, :]
    return y


if __name__ == "__main__":
    key = jax.random.PRNGKey(0)
    # Module defaults: embed_dim=96, out_chans=3, patch_size=4; small spatial dims.
    B, embed_dim, H, W = 2, 96, 16, 16
    out_chans, patch_size = 3, 4
    cout = out_chans * patch_size ** 2

    kx, kw, kb = jax.random.split(key, 3)
    x = jax.random.normal(kx, (B, embed_dim, H, W), jnp.float32)
    scale = math.sqrt(1.0 / embed_dim)
    params = {
        "w": jax.random.normal(kw, (cout, embed_dim), jnp.float32) * scale,
        "b": jax.random.normal(kb, (cout,), jnp.float32) * scale,
    }

    fwd = jax.jit(functools.partial(patch_unembed_forward, patch_size=patch_size))
    out = jax.block_until_ready(fwd(x, params))
    assert out.shape == (B, out_chans, H * patch_size, W * patch_size)

    # Pure-JAX / numpy reference
    hp = jax.lax.Precision.HIGHEST
    z_ref = jnp.einsum("oc,bchw->bohw", params["w"], x, precision=hp) \
        + params["b"][None, :, None, None]
    ref = _ref_pixel_shuffle_np(np.asarray(z_ref), patch_size)
    np.testing.assert_allclose(np.asarray(out), ref, rtol=1e-3, atol=1e-3)

    # bf16-in-HBM path: bf16 x/w/z in HBM, f32 accumulation; loose tolerance.
    out_bf16 = jax.block_until_ready(
        jax.jit(functools.partial(
            patch_unembed_forward, patch_size=patch_size, use_bf16=True))(x, params))
    assert out_bf16.dtype == jnp.bfloat16
    np.testing.assert_allclose(np.asarray(out_bf16, dtype=np.float32), ref,
                               rtol=1e-1, atol=1e-1)

    print("KERNEL_OK")
</pallas_src>

<mosaic_0001>
module attributes {stable_mosaic.version = 11 : i64} {
  func.func @_proj1x1_kernel(%arg0: i32, %arg1: i32, %arg2: memref<1x96x256xf32, #tpu.memory_space<vmem>>, %arg3: memref<48x96xf32, #tpu.memory_space<vmem>>, %arg4: memref<48x1xf32, #tpu.memory_space<vmem>>, %arg5: memref<1x48x256xf32, #tpu.memory_space<vmem>>) attributes {dimension_semantics = [#tpu.dimension_semantics<parallel>, #tpu.dimension_semantics<parallel>], iteration_bounds = array<i64: 2, 1>, scalar_prefetch = 0 : i64, scratch_operands = 0 : i64, tpu.core_type = #tpu.core_type<tc>, window_params = [{transform_indices = @transform_0, window_bounds = array<i64: 1, 96, 256>}, {pipeline_mode = #tpu.pipeline_mode<synchronous>, transform_indices = @transform_1, window_bounds = array<i64: 48, 96>}, {pipeline_mode = #tpu.pipeline_mode<synchronous>, transform_indices = @transform_2, window_bounds = array<i64: 48, 1>}, {transform_indices = @transform_3, window_bounds = array<i64: 1, 48, 256>}]} {
    %c0 = arith.constant 0 : index
    %c0_0 = arith.constant 0 : index
    %0 = vector.load %arg3[%c0, %c0_0] : memref<48x96xf32, #tpu.memory_space<vmem>>, vector<48x96xf32>
    %c0_1 = arith.constant 0 : index
    %c0_2 = arith.constant 0 : index
    %c0_3 = arith.constant 0 : index
    %1 = vector.load %arg2[%c0_1, %c0_2, %c0_3] : memref<1x96x256xf32, #tpu.memory_space<vmem>>, vector<1x96x256xf32>
    %2 = vector.shape_cast %1 : vector<1x96x256xf32> to vector<96x256xf32>
    %cst = arith.constant dense<0.000000e+00> : vector<48x256xf32>
    %3 = tpu.matmul %0, %2, %cst {dimension_numbers = #tpu.dot_dimension_numbers<[1], [0], [0], [1], [0, 0, 1, 1], [], []>} : vector<48x96xf32>, vector<96x256xf32>, vector<48x256xf32> -> vector<48x256xf32>
    %c0_4 = arith.constant 0 : index
    %c0_5 = arith.constant 0 : index
    %4 = vector.load %arg4[%c0_4, %c0_5] : memref<48x1xf32, #tpu.memory_space<vmem>>, vector<48x1xf32>
    %5 = vector.broadcast %4 : vector<48x1xf32> to vector<48x256xf32>
    %6 = arith.addf %3, %5 : vector<48x256xf32>
    %c0_6 = arith.constant 0 : index
    %c0_7 = arith.constant 0 : index
    %c0_8 = arith.constant 0 : index
    %7 = vector.load %arg5[%c0_6, %c0_7, %c0_8] : memref<1x48x256xf32, #tpu.memory_space<vmem>>, vector<1x48x256xf32>
    %8 = vector.shape_cast %7 : vector<1x48x256xf32> to vector<48x256xf32>
    %9 = vector.shape_cast %6 : vector<48x256xf32> to vector<1x48x256xf32>
    tpu.vector_store %arg5[%c0_6, %c0_7, %c0_8], %9 {strides = array<i32>} : memref<1x48x256xf32, #tpu.memory_space<vmem>>, vector<1x48x256xf32>,
    return
  }
  func.func @transform_0(%arg0: i32, %arg1: i32) -> (i32, i32, i32) {
    %c0_i32 = arith.constant 0 : i32
    %c0_i32_0 = arith.constant 0 : i32
    return %arg0, %c0_i32, %arg1 : i32, i32, i32
  }
  func.func @transform_1(%arg0: i32, %arg1: i32) -> (i32, i32) {
    %c0_i32 = arith.constant 0 : i32
    %c0_i32_0 = arith.constant 0 : i32
    %c0_i32_1 = arith.constant 0 : i32
    return %c0_i32, %c0_i32_0 : i32, i32
  }
  func.func @transform_2(%arg0: i32, %arg1: i32) -> (i32, i32) {
    %c0_i32 = arith.constant 0 : i32
    %c0_i32_0 = arith.constant 0 : i32
    %c0_i32_1 = arith.constant 0 : i32
    return %c0_i32, %c0_i32_0 : i32, i32
  }
  func.func @transform_3(%arg0: i32, %arg1: i32) -> (i32, i32, i32) {
    %c0_i32 = arith.constant 0 : i32
    %c0_i32_0 = arith.constant 0 : i32
    return %arg0, %c0_i32, %arg1 : i32, i32, i32
  }
}

</mosaic_0001>

<bundles_post_ra>
// kernel: patch_unembed_forward.1
= control target key start
LH: loop header
LB: loop body
LE: loop exit
PB: predicated region body
PF: predicated region fallthrough
CT: control target
= control target key end

     0   :  { %8 = vsyncpa [#allocation3], 0  ;;  %s685_s12 = smov 0   ;;  %s687_s13 = smov 0   ;;  %s818_s0 = inlined_call_operand.vmem [shape: f32[2,96,256], index: 0, kind: input, shape index: {}]   ;;  %s819_s1 = inlined_call_operand.hbm [shape: f32[48,96], index: 1, kind: input, shape index: {}]   ;;  %s820_s2 = inlined_call_operand.vmem [shape: f32[48,1], index: 2, kind: input, shape index: {}]   ;;  %s821_s3 = inlined_call_operand.vmem [shape: f32[2,48,256], index: 3, kind: output, shape index: {}]  }
   0x1   :  { %s689_s14 = smov 0  }
   0x2 LB: > { %s522_s15 = sadd.s32 4294967295, %s658_s14   ;;  %s26_s16 = sadd.s32 1, %s654_s13  ;;  %s658_s14 = sphi %s689_s14, %s14_s14   ;;  %s654_s13 = sphi %s687_s13, %s825_s13   ;;  %s650_s12 = sphi %s685_s12, %s824_s12  }
   0x3   : > { %p28_p0 = scmp.ge.s32.totalorder %s26_s16, 2  ;;  %p524_p1 = scmp.ge.s32.totalorder %s658_s14, 1 }
   0x4   : > { %p129_p2 = scmp.lt.s32.totalorder %s658_s14, 3  ;;  %p710_p4 = scmp.eq.s32.totalorder %s522_s15, 0 }
   0x5   : > { %s827_s16 = smov (%p28_p0, %s26_s16), 0  ;;  %s660_s19 = smov [#allocation2]  }
   0x6   : > { %p706_p3 = pnand %p524_p1, %p129_p2  ;;  %s141_s20 = sshll.u32 %s660_s19, 4  ;;  %s142_s20 = int_to_ptr.vmem [resolvable:$true] %s141_s20 }
   0x7   : > { %s617_s21 = scalar_lea.vmem %s142_s20, 768  ;;  %p625_p11 = scmp.lt.s32.totalorder %s142_s20, %s142_s20 }
   0x8   : > { %p569_p5 = pneg %p706_p3  ;;  %p618_p8 = scmp.ne.s32.totalorder %s142_s20, %s617_s21 }
   0x9   : > { %p626_p12 = scmp.lt.s32.totalorder %s617_s21, %s617_s21 }
   0xa   : > { %p570_p6 = pnand %p710_p4, %p569_p5 }
   0xb   : > { %p627_p13 = por %p626_p12, %p625_p11 }
   0xc   : > { %p608_p7 = pneg %p570_p6 }
   0xe   : > { %p620_p9 = pnand %p618_p8, %p608_p7 }
  0x10   : > { %p621_p10 = pneg %p620_p9 }
  0x12   : > { %p628_p0 = pnand %p627_p13, %p621_p10 }
  0x14   : > { %631 = shalt.err (!%p628_p0)
}
  0x15   : > { %s661_s22 = smov 128   ;;  %s662_s23 = smov 8  }
  0x16   : > { %572 = dma.hbm_to_vmem [thread:$0]  (!%p570_p6), %s819_s1, 768, %s142_s20, [#allocation3], %s661_s22, %s661_s22, %s662_s23  }
  0x17   : > { %173 = sbr.rel (%p706_p3) target bundleno = 266 (0x10a), region = 32 }
  0x1c   : > { %645 = dma.done.wait (%p710_p4), [#allocation3], 768  }
  0x1d   : > { %647 = vsyncadd (%p710_p4), [#allocation3], 4294966528  ;;  %p206_p1 = scmp.lt.s32.totalorder %s650_s12, 1  ;;  %v663_v0 = vmov 0.0   ;;  %v664_v1 = vmov 0   ;;  %v225_v26 = vld [vmem:[#allocation2] sm:$0xff] }
  0x1e   : > { %374 = vmatprep.mubr.f32.mxu0 %v663_v0  ;;  %392 = vmatprep.mubr.f32.mxu1 %v663_v0  ;;  %vm291_vm0 = vcmask 785408   ;;  %v228_v27 = vld [vmem:[#allocation2 + $0x18] sm:$0xff]  ;;  %v257_v28 = vld [vmem:[%s820_s2 + $0x10] sm:$0xff]  ;;  %v255_v29 = vld [vmem:[%s820_s2] sm:$0xff] }
  0x1f   : > { %s829_s12 = smov (!%p206_p1, %s650_s12), 1  ;;  %605 = vset.pattern.permute.xlu1 %v664_v1  ;;  %604 = vset.pattern.permute.xlu0 %v664_v1  ;;  %v226_v30 = vld [vmem:[#allocation2 + $0x8] sm:$0xff]  ;;  %v229_v31 = vld [vmem:[#allocation2 + $0x20] sm:$0xff]  ;;  %v258_v32 = vld [vmem:[%s820_s2 + $0x18] sm:$0xff] }
  0x20   : > { %s563_s26 = smul.u32 192, %s829_s12  ;;  %273 = vperm.xlu1 %605, %v257_v28   ;;  %263 = vperm.xlu0 %604, %v255_v29   ;;  %v256_v33 = vld [vmem:[%s820_s2 + $0x8] sm:$0xff]  ;;  %v227_v34 = vld [vmem:[#allocation2 + $0x10] sm:$0xff]  ;;  %v259_v37 = vld [vmem:[%s820_s2 + $0x20] sm:$0xff] }
  0x21   : > { %v230_v35 = vld [vmem:[#allocation2 + $0x28] sm:$0xff]  ;;  %s564_s19 = smul.u32 96, %s829_s12 }
  0x22   : > { %s737_s29 = scalar_lea.vmem %s818_s0, %s563_s26  ;;  %v260_v36 = vld [vmem:[%s820_s2 + $0x28] sm:$0xff] }
  0x23   : > { %v254_v2 = vld [vmem:[%s737_s29 + $0xb8] sm:$0xff]  ;;  %v253_v3 = vld [vmem:[%s737_s29 + $0xb0] sm:$0xff]  ;;  %v252_v4 = vld [vmem:[%s737_s29 + $0xa8] sm:$0xff]  ;;  %s795_s22 = scalar_lea.vmem %s821_s3, %s564_s19 }
  0x24   : > { %318 = vmatprep.subr.mxu0 %v254_v2  ;;  %539 = vmatprep.subr.mxu1 %v254_v2  ;;  %v251_v5 = vld [vmem:[%s737_s29 + $0xa0] sm:$0xff]  ;;  %v250_v6 = vld [vmem:[%s737_s29 + $0x98] sm:$0xff]  ;;  %v249_v7 = vld [vmem:[%s737_s29 + $0x90] sm:$0xff] }
  0x25   : > { %319 = vmatpush1.msra.mxu0 %v253_v3  ;;  %551 = vmatpush1.msra.mxu1 %v253_v3  ;;  %v248_v8 = vld [vmem:[%s737_s29 + $0x88] sm:$0xff]  ;;  %v247_v9 = vld [vmem:[%s737_s29 + $0x80] sm:$0xff]  ;;  %v246_v10 = vld [vmem:[%s737_s29 + $0x78] sm:$0xff] }
  0x26   : > { %320 = vmatprep.subr.mxu0 %v252_v4  ;;  %540 = vmatprep.subr.mxu1 %v252_v4  ;;  %v245_v11 = vld [vmem:[%s737_s29 + $0x70] sm:$0xff]  ;;  %v244_v12 = vld [vmem:[%s737_s29 + $0x68] sm:$0xff]  ;;  %v243_v13 = vld [vmem:[%s737_s29 + $0x60] sm:$0xff] }
  0x27   : > { %321 = vmatpush1.msra.mxu0 %v251_v5  ;;  %552 = vmatpush1.msra.mxu1 %v251_v5  ;;  %v242_v14 = vld [vmem:[%s737_s29 + $0x58] sm:$0xff]  ;;  %v241_v15 = vld [vmem:[%s737_s29 + $0x50] sm:$0xff]  ;;  %v240_v16 = vld [vmem:[%s737_s29 + $0x48] sm:$0xff] }
  0x28   : > { %322 = vmatprep.subr.mxu0 %v250_v6  ;;  %541 = vmatprep.subr.mxu1 %v250_v6  ;;  %v239_v17 = vld [vmem:[%s737_s29 + $0x40] sm:$0xff]  ;;  %v238_v18 = vld [vmem:[%s737_s29 + $0x38] sm:$0xff]  ;;  %v237_v19 = vld [vmem:[%s737_s29 + $0x30] sm:$0xff] }
  0x29   : > { %323 = vmatpush1.msra.mxu0 %v249_v7  ;;  %553 = vmatpush1.msra.mxu1 %v249_v7  ;;  %v236_v20 = vld [vmem:[%s737_s29 + $0x28] sm:$0xff]  ;;  %v235_v21 = vld [vmem:[%s737_s29 + $0x20] sm:$0xff]  ;;  %v234_v22 = vld [vmem:[%s737_s29 + $0x18] sm:$0xff] }
  0x2a   : > { %324 = vmatprep.subr.mxu0 %v248_v8  ;;  %542 = vmatprep.subr.mxu1 %v248_v8  ;;  %v233_v23 = vld [vmem:[%s737_s29 + $0x10] sm:$0xff]  ;;  %v232_v24 = vld [vmem:[%s737_s29 + $0x8] sm:$0xff]  ;;  %v231_v25 = vld [vmem:[%s737_s29] sm:$0xff] }
  0x2b   : > { %325 = vmatpush1.msra.mxu0 %v247_v9  ;;  %554 = vmatpush1.msra.mxu1 %v247_v9 }
  0x2c   : > { %326 = vmatprep.subr.mxu0 %v246_v10  ;;  %543 = vmatprep.subr.mxu1 %v246_v10 }
  0x2d   : > { %327 = vmatpush1.msra.mxu0 %v245_v11  ;;  %555 = vmatpush1.msra.mxu1 %v245_v11 }
  0x2e   : > { %328 = vmatprep.subr.mxu0 %v244_v12  ;;  %544 = vmatprep.subr.mxu1 %v244_v12 }
  0x2f   : > { %329 = vmatpush1.msra.mxu0 %v243_v13  ;;  %556 = vmatpush1.msra.mxu1 %v243_v13 }
  0x30   : > { %330 = vmatprep.subr.mxu0 %v242_v14  ;;  %545 = vmatprep.subr.mxu1 %v242_v14 }
  0x31   : > { %331 = vmatpush1.msra.mxu0 %v241_v15  ;;  %557 = vmatpush1.msra.mxu1 %v241_v15 }
  0x32   : > { %332 = vmatprep.subr.mxu0 %v240_v16  ;;  %546 = vmatprep.subr.mxu1 %v240_v16 }
  0x33   : > { %333 = vmatpush1.msra.mxu0 %v239_v17  ;;  %558 = vmatpush1.msra.mxu1 %v239_v17 }
  0x34   : > { %334 = vmatprep.subr.mxu0 %v238_v18  ;;  %547 = vmatprep.subr.mxu1 %v238_v18 }
  0x35   : > { %335 = vmatpush1.msra.mxu0 %v237_v19  ;;  %559 = vmatpush1.msra.mxu1 %v237_v19 }
  0x36   : > { %336 = vmatprep.subr.mxu0 %v236_v20  ;;  %548 = vmatprep.subr.mxu1 %v236_v20 }
  0x37   : > { %337 = vmatpush1.msra.mxu0 %v235_v21  ;;  %560 = vmatpush1.msra.mxu1 %v235_v21 }
  0x38   : > { %338 = vmatprep.subr.mxu0 %v234_v22  ;;  %549 = vmatprep.subr.mxu1 %v234_v22 }
  0x39   : > { %339 = vmatpush1.msra.mxu0 %v233_v23  ;;  %561 = vmatpush1.msra.mxu1 %v233_v23 }
  0x3a   : > { %340 = vmatprep.subr.mxu0 %v232_v24  ;;  %550 = vmatprep.subr.mxu1 %v232_v24 }
  0x3b   : > { %341 = vmatpush1.msra.mxu0 %v231_v25  ;;  %562 = vmatpush1.msra.mxu1 %v231_v25 }
  0x3c   : > { %531 = vmatmul.mubr.msk.f32.vlgmr.msra.gmra.mxu0 %vm291_vm0, %v225_v26  ;;  %534 = vmatmul.mubr.msk.f32.vlgmr.msra.gmra.mxu1 %vm291_vm0, %v228_v27 }
  0x3d   : > { %380 = vmatprep.mubr.f32.mxu0 %v663_v0  ;;  %398 = vmatprep.mubr.f32.mxu1 %v663_v0 }
  0x3e   : > { %278 = vperm.xlu1 %605, %v258_v32   ;;  %268 = vperm.xlu0 %604, %v256_v33  }
  0x40   : > { %532 = vmatmul.mubr.msk.f32.gmra.mxu0 %vm291_vm0, %v226_v30  ;;  %535 = vmatmul.mubr.msk.f32.gmra.mxu1 %vm291_vm0, %v229_v31 }
  0x41   : > { %386 = vmatprep.mubr.f32.mxu0 %v663_v0  ;;  %404 = vmatprep.mubr.f32.mxu1 %v663_v0 }
  0x42   : > { %288 = vperm.xlu1 %605, %v260_v36   ;;  %283 = vperm.xlu0 %604, %v259_v37  }
  0x44   : > { %533 = vmatmul.mubr.msk.f32.gmra.mxu0 %vm291_vm0, %v227_v34  ;;  %536 = vmatmul.mubr.msk.f32.gmra.mxu1 %vm291_vm0, %v230_v35 }
  0x9b   : > { %v264_v38 = vpop.permute.xlu0 %263  ;;  %v274_v39 = vpop.permute.xlu1 %273 }
  0xb9   : > { %v269_v40 = vpop.permute.xlu0 %268  ;;  %v279_v41 = vpop.permute.xlu1 %278 }
  0xbd   : > { %v284_v48 = vpop.permute.xlu0 %283  ;;  %v289_v57 = vpop.permute.xlu1 %288 }
  0xfc   : > { %v376_v42 = vpop.f32.mrf.mxu0  ;;  %v394_v43 = vpop.f32.mrf.mxu1 }
  0xfd   : > { %v377_v44 = vadd.f32 %v376_v42, %v264_v38  ;;  %v395_v45 = vadd.f32 %v394_v43, %v279_v41 }
  0xfe   : > { %v378_v46 = vpop.f32.mrf.mxu0  ;;  %v396_v47 = vpop.f32.mrf.mxu1 }
  0xff   : > { %411 = vst [vmem:[%s795_s22] sm:$0xff] %v377_v44  ;;  %417 = vst [vmem:[%s795_s22 + $0x30] sm:$0xff] %v395_v45  ;;  %v379_v49 = vadd.f32 %v378_v46, %v264_v38  ;;  %v397_v50 = vadd.f32 %v396_v47, %v279_v41 }
 0x100   : > { %v382_v51 = vpop.f32.mrf.mxu0  ;;  %v400_v52 = vpop.f32.mrf.mxu1 }
 0x101   : > { %412 = vst [vmem:[%s795_s22 + $0x8] sm:$0xff] %v379_v49  ;;  %418 = vst [vmem:[%s795_s22 + $0x38] sm:$0xff] %v397_v50  ;;  %v383_v53 = vadd.f32 %v382_v51, %v269_v40  ;;  %v401_v54 = vadd.f32 %v400_v52, %v284_v48 }
 0x102   : > { %v384_v55 = vpop.f32.mrf.mxu0  ;;  %v402_v56 = vpop.f32.mrf.mxu1 }
 0x103   : > { %413 = vst [vmem:[%s795_s22 + $0x10] sm:$0xff] %v383_v53  ;;  %419 = vst [vmem:[%s795_s22 + $0x40] sm:$0xff] %v401_v54  ;;  %v385_v58 = vadd.f32 %v384_v55, %v269_v40  ;;  %v403_v59 = vadd.f32 %v402_v56, %v284_v48 }
 0x104   : > { %v388_v60 = vpop.f32.mrf.mxu0  ;;  %v406_v61 = vpop.f32.mrf.mxu1 }
 0x105   : > { %414 = vst [vmem:[%s795_s22 + $0x18] sm:$0xff] %v385_v58  ;;  %420 = vst [vmem:[%s795_s22 + $0x48] sm:$0xff] %v403_v59  ;;  %v389_v62 = vadd.f32 %v388_v60, %v274_v39  ;;  %v407_v63 = vadd.f32 %v406_v61, %v289_v57 }
 0x106   : > { %v390_v0 = vpop.f32.mrf.mxu0  ;;  %v408_v1 = vpop.f32.mrf.mxu1 }
 0x107   : > { %415 = vst [vmem:[%s795_s22 + $0x20] sm:$0xff] %v389_v62  ;;  %421 = vst [vmem:[%s795_s22 + $0x50] sm:$0xff] %v407_v63  ;;  %v391_v2 = vadd.f32 %v390_v0, %v274_v39  ;;  %v409_v3 = vadd.f32 %v408_v1, %v289_v57 }
 0x109   : > { %416 = vst [vmem:[%s795_s22 + $0x28] sm:$0xff] %v391_v2  ;;  %422 = vst [vmem:[%s795_s22 + $0x58] sm:$0xff] %v409_v3 }
 0x10a PF: > { %s14_s14 = sadd.s32 1, %s658_s14   ;;  %s824_s12 = smov %s654_s13 }
 0x10b   : > { %p11_p2 = scmp.ge.s32.totalorder %s14_s14, 4   ;;  %s825_s13 = smov %s827_s16 }
 0x10d   :  { %13 = sbr.rel (!%p11_p2) target bundleno = 2 (0x2), region = 67 }
 0x112   :  { %453 = vsyncpa [#allocation3], 1 }
 0x113   :  { %455 = vsyncpa [#allocation3 + $0x1], 1 }

</bundles_post_ra>
